<compile_context>
chip_gen: v7x
topology: tpu7x:2x2x1
jax: 0.10.0
libtpu: 0.0.40
codegen_flags: <defaults>
</compile_context>

<pallas_src>
import functools

import jax
import jax.numpy as jnp
from jax import lax
from jax.experimental import pallas as pl
from jax.experimental.pallas import tpu as pltpu


def _round_up(x: int, m: int) -> int:
    return (x + m - 1) // m * m


def _residual_block_kernel(params_ref, seed_ref, x_ref, w_ref, b_ref, o_ref,
                           *, eps: float, p: float, tile_rows: int,
                           d_model: int):
    """Fused: out = x + dropout( LN(x) @ W + b )

    params_ref : SMEM f32[2]   -> [alpha, beta]   (LayerNormalization scalars)
    seed_ref   : SMEM i32[1]   -> dropout seed
    x_ref      : VMEM (tm, D)  input row tile (f32)
    w_ref      : VMEM (D, D)   sublayer (Linear) weight (bf16, resident)
    b_ref      : VMEM (1, D)   sublayer (Linear) bias (f32)
    o_ref      : VMEM (tm, D)  output row tile (f32)
    """
    alpha = params_ref[0]
    beta = params_ref[1]

    x = x_ref[...]                                   # (tm, D) f32
    d = x.shape[-1]

    # --- LayerNormalization (matches the torch module: unbiased std, /(std+eps)) ---
    mean = jnp.mean(x, axis=-1, keepdims=True)
    xc = x - mean
    var = jnp.sum(xc * xc, axis=-1, keepdims=True) * (1.0 / float(d - 1))
    std = jnp.sqrt(var)
    # EUP reciprocal (separate VLIW slot); fold alpha into the per-row scale.
    scale = alpha * pl.reciprocal(std + eps, approx=True)      # (tm, 1)
    xn = xc * scale + beta

    # --- sublayer: Linear(D, D) on the MXU, bf16 inputs, f32 accumulation ---
    y = jnp.dot(xn.astype(w_ref.dtype), w_ref[...],
                preferred_element_type=jnp.float32) + b_ref[...]

    # --- dropout (training semantics: keep w.p. 1-p, scale by 1/(1-p)) ---
    if p >= 1.0:
        y = jnp.zeros_like(y)
    elif p > 0.0:
        # Counter-based hash on the global element index (tile-invariant,
        # deterministic, works under both Mosaic and interpret mode).
        row = lax.broadcasted_iota(jnp.int32, y.shape, 0) \
            + pl.program_id(0) * tile_rows
        col = lax.broadcasted_iota(jnp.int32, y.shape, 1)
        idx = (row * d_model + col).astype(jnp.uint32)
        h = idx ^ seed_ref[0].astype(jnp.uint32)
        h = h ^ (h >> 16)
        h = h * jnp.uint32(0x85EBCA6B)
        h = h ^ (h >> 13)
        h = h * jnp.uint32(0xC2B2AE35)
        h = h ^ (h >> 16)
        # top-24 bits -> uniform [0, 1)
        u = (h >> 8).astype(jnp.int32).astype(jnp.float32) * (1.0 / 16777216.0)
        keep = u >= p
        y = jnp.where(keep, y * (1.0 / (1.0 - p)), 0.0)
    # p == 0.0 (eval mode): dropout is identity.

    # --- residual add ---
    o_ref[...] = x + y


def residual_block(x, w, b, alpha, beta, *, eps=1e-6, dropout_p=0.0, seed=0,
                   tile_rows=256):
    """x: (B, S, D) f32. Returns x + dropout(LN(x) @ w + b), shape (B, S, D)."""
    B, S, D = x.shape
    assert D % 128 == 0, "d_model must be lane aligned (multiple of 128)"
    rows = B * S

    # Large row tiles feed the MXU / amortize per-step overhead; clamp to the
    # (sublane-rounded) row count so tiny inputs don't pay for padding.
    tm = min(_round_up(int(tile_rows), 8), _round_up(rows, 8))
    padded_rows = _round_up(rows, tm)

    x2 = x.reshape(rows, D).astype(jnp.float32)
    if padded_rows != rows:
        x2 = jnp.pad(x2, ((0, padded_rows - rows), (0, 0)))

    params = jnp.asarray([alpha, beta], dtype=jnp.float32)
    seed_arr = jnp.asarray([seed], dtype=jnp.int32)
    w_bf16 = w.astype(jnp.bfloat16)      # halves resident-weight VMEM/HBM bytes
    b2 = b.reshape(1, D).astype(jnp.float32)

    kernel = functools.partial(_residual_block_kernel, eps=float(eps),
                               p=float(dropout_p), tile_rows=tm, d_model=D)

    grid = (padded_rows // tm,)

    # VMEM budget: double-buffered f32 x/out tiles + resident bf16 weight
    # (double-buffered by default) + bias + headroom.  Capped at 64 MiB so the
    # same number is valid on v7x (64 MiB physical VMEM).
    vmem_bytes = (2 * 2 * tm * D * 4) + (2 * D * D * 2) + (2 * D * 4) + (4 << 20)
    vmem_limit = int(min(max(vmem_bytes, 16 << 20), 64 << 20))

    cost = pl.CostEstimate(
        flops=2 * padded_rows * D * D + 10 * padded_rows * D,
        transcendentals=2 * padded_rows,                  # sqrt + reciprocal per row
        bytes_accessed=padded_rows * D * 4 * 2 + D * D * 2 + D * 4,
    )

    out2 = pl.pallas_call(
        kernel,
        out_shape=jax.ShapeDtypeStruct((padded_rows, D), jnp.float32),
        grid_spec=pl.GridSpec(
            grid=grid,
            in_specs=[
                pl.BlockSpec(memory_space=pltpu.SMEM),            # [alpha, beta]
                pl.BlockSpec(memory_space=pltpu.SMEM),            # seed
                pl.BlockSpec((tm, D), lambda i: (i, 0)),          # x row tile
                pl.BlockSpec((D, D), lambda i: (0, 0)),           # W (resident)
                pl.BlockSpec((1, D), lambda i: (0, 0)),           # bias
            ],
            out_specs=pl.BlockSpec((tm, D), lambda i: (i, 0)),
        ),
        compiler_params=pltpu.CompilerParams(
            dimension_semantics=("parallel",),
            vmem_limit_bytes=vmem_limit),
        cost_estimate=cost,
    )(params, seed_arr, x2, w_bf16, b2)

    return out2[:rows].reshape(B, S, D)


def _reference_no_dropout(x, w, b, alpha, beta, eps=1e-6):
    """Pure-JAX reference for dropout_p = 0 (mirrors the bf16 matmul cast)."""
    mean = jnp.mean(x, axis=-1, keepdims=True)
    xc = x - mean
    var = jnp.sum(xc * xc, axis=-1, keepdims=True) / (x.shape[-1] - 1)
    std = jnp.sqrt(var)
    xn = alpha * xc / (std + eps) + beta
    xn16 = xn.astype(jnp.bfloat16).astype(jnp.float32)
    w16 = w.astype(jnp.bfloat16).astype(jnp.float32)
    y = jnp.einsum("bsd,de->bse", xn16, w16) + b
    return x + y


if __name__ == "__main__":
    key = jax.random.PRNGKey(0)
    k_x, k_w = jax.random.split(key)

    B, S, D = 2, 8, 128            # batch=2, seq=8, d_model=128
    dropout_p = 0.1

    x = jax.random.normal(k_x, (B, S, D), dtype=jnp.float32)
    # sublayer = Linear(D, D), deterministic init
    w = jax.random.normal(k_w, (D, D), dtype=jnp.float32) * 0.02
    b = jnp.zeros((D,), dtype=jnp.float32)
    alpha = 1.0   # LayerNormalization.alpha init (torch.ones(1))
    beta = 0.0    # LayerNormalization.bias  init (torch.zeros(1))

    # Correctness check with dropout disabled (deterministic path).
    out_nodrop = residual_block(x, w, b, alpha, beta, dropout_p=0.0)
    jax.block_until_ready(out_nodrop)
    ref = _reference_no_dropout(x, w, b, alpha, beta)
    assert out_nodrop.shape == (B, S, D)
    assert jnp.allclose(out_nodrop, ref, atol=3e-2, rtol=3e-2), \
        "mismatch vs reference"

    # Training-mode run with dropout (deterministic hash-based mask).
    out = residual_block(x, w, b, alpha, beta, dropout_p=dropout_p, seed=1234)
    jax.block_until_ready(out)
    assert bool(jnp.all(jnp.isfinite(out)))

    print("KERNEL_OK")
</pallas_src>

<mosaic_0001>
module attributes {stable_mosaic.version = 11 : i64} {
  func.func @_residual_block_kernel(%arg0: i32, %arg1: memref<2xf32, #tpu.memory_space<smem>>, %arg2: memref<1xi32, #tpu.memory_space<smem>>, %arg3: memref<16x128xf32, #tpu.memory_space<vmem>>, %arg4: memref<128x128xbf16, #tpu.memory_space<vmem>>, %arg5: memref<1x128xf32, #tpu.memory_space<vmem>>, %arg6: memref<16x128xf32, #tpu.memory_space<vmem>>) attributes {dimension_semantics = [#tpu.dimension_semantics<parallel>], iteration_bounds = array<i64: 1>, scalar_prefetch = 0 : i64, scratch_operands = 0 : i64, tpu.core_type = #tpu.core_type<tc>, window_params = [{transform_indices = @transform_0, window_bounds = array<i64: 2>}, {transform_indices = @transform_1, window_bounds = array<i64: 1>}, {transform_indices = @transform_2, window_bounds = array<i64: 16, 128>}, {pipeline_mode = #tpu.pipeline_mode<synchronous>, transform_indices = @transform_3, window_bounds = array<i64: 128, 128>}, {pipeline_mode = #tpu.pipeline_mode<synchronous>, transform_indices = @transform_4, window_bounds = array<i64: 1, 128>}, {transform_indices = @transform_5, window_bounds = array<i64: 16, 128>}]} {
    %c0 = arith.constant 0 : index
    %0 = memref.load %arg1[%c0] : memref<2xf32, #tpu.memory_space<smem>>
    %c1 = arith.constant 1 : index
    %1 = memref.load %arg1[%c1] : memref<2xf32, #tpu.memory_space<smem>>
    %c0_0 = arith.constant 0 : index
    %c0_1 = arith.constant 0 : index
    %2 = vector.load %arg3[%c0_0, %c0_1] : memref<16x128xf32, #tpu.memory_space<vmem>>, vector<16x128xf32>
    %cst = arith.constant dense<0.000000e+00> : vector<16xf32>
    %3 = vector.multi_reduction <add>, %2, %cst [1] : vector<16x128xf32> to vector<16xf32>
    %4 = vector.shape_cast %3 : vector<16xf32> to vector<16x1xf32>
    %cst_2 = arith.constant 1.280000e+02 : f32
    %5 = vector.broadcast %cst_2 : f32 to vector<16x1xf32>
    %6 = arith.divf %4, %5 : vector<16x1xf32>
    %7 = vector.broadcast %6 : vector<16x1xf32> to vector<16x128xf32>
    %8 = arith.subf %2, %7 : vector<16x128xf32>
    %9 = arith.mulf %8, %8 : vector<16x128xf32>
    %cst_3 = arith.constant dense<0.000000e+00> : vector<16xf32>
    %10 = vector.multi_reduction <add>, %9, %cst_3 [1] : vector<16x128xf32> to vector<16xf32>
    %11 = vector.shape_cast %10 : vector<16xf32> to vector<16x1xf32>
    %cst_4 = arith.constant 0.00787401571 : f32
    %12 = vector.broadcast %cst_4 : f32 to vector<16x1xf32>
    %13 = arith.mulf %11, %12 : vector<16x1xf32>
    %14 = math.sqrt %13 : vector<16x1xf32>
    %cst_5 = arith.constant 9.99999997E-7 : f32
    %15 = vector.broadcast %cst_5 : f32 to vector<16x1xf32>
    %16 = arith.addf %14, %15 : vector<16x1xf32>
    %17 = tpu.reciprocal %16 {approx = true} : vector<16x1xf32> -> vector<16x1xf32>
    %18 = vector.broadcast %0 : f32 to vector<16x1xf32>
    %19 = arith.mulf %18, %17 : vector<16x1xf32>
    %20 = vector.broadcast %19 : vector<16x1xf32> to vector<16x128xf32>
    %21 = arith.mulf %8, %20 : vector<16x128xf32>
    %22 = vector.broadcast %1 : f32 to vector<16x128xf32>
    %23 = arith.addf %21, %22 : vector<16x128xf32>
    %24 = arith.truncf %23 : vector<16x128xf32> to vector<16x128xbf16>
    %c0_6 = arith.constant 0 : index
    %c0_7 = arith.constant 0 : index
    %25 = vector.load %arg4[%c0_6, %c0_7] : memref<128x128xbf16, #tpu.memory_space<vmem>>, vector<128x128xbf16>
    %cst_8 = arith.constant dense<0.000000e+00> : vector<16x128xf32>
    %26 = tpu.matmul %24, %25, %cst_8 {dimension_numbers = #tpu.dot_dimension_numbers<[1], [0], [0], [1], [0, 0, 1, 1], [], []>} : vector<16x128xbf16>, vector<128x128xbf16>, vector<16x128xf32> -> vector<16x128xf32>
    %c0_9 = arith.constant 0 : index
    %c0_10 = arith.constant 0 : index
    %27 = vector.load %arg5[%c0_9, %c0_10] : memref<1x128xf32, #tpu.memory_space<vmem>>, vector<1x128xf32>
    %28 = vector.broadcast %27 : vector<1x128xf32> to vector<16x128xf32>
    %29 = arith.addf %26, %28 : vector<16x128xf32>
    %30 = arith.addf %2, %29 : vector<16x128xf32>
    %c0_11 = arith.constant 0 : index
    %c0_12 = arith.constant 0 : index
    %31 = vector.load %arg6[%c0_11, %c0_12] : memref<16x128xf32, #tpu.memory_space<vmem>>, vector<16x128xf32>
    tpu.vector_store %arg6[%c0_11, %c0_12], %30 {strides = array<i32>} : memref<16x128xf32, #tpu.memory_space<vmem>>, vector<16x128xf32>,
    return
  }
  func.func @transform_0(%arg0: i32) -> i32 {
    %c0_i32 = arith.constant 0 : i32
    %c0_i32_0 = arith.constant 0 : i32
    return %c0_i32 : i32
  }
  func.func @transform_1(%arg0: i32) -> i32 {
    %c0_i32 = arith.constant 0 : i32
    %c0_i32_0 = arith.constant 0 : i32
    return %c0_i32 : i32
  }
  func.func @transform_2(%arg0: i32) -> (i32, i32) {
    %c0_i32 = arith.constant 0 : i32
    %c0_i32_0 = arith.constant 0 : i32
    return %arg0, %c0_i32 : i32, i32
  }
  func.func @transform_3(%arg0: i32) -> (i32, i32) {
    %c0_i32 = arith.constant 0 : i32
    %c0_i32_0 = arith.constant 0 : i32
    %c0_i32_1 = arith.constant 0 : i32
    return %c0_i32, %c0_i32_0 : i32, i32
  }
  func.func @transform_4(%arg0: i32) -> (i32, i32) {
    %c0_i32 = arith.constant 0 : i32
    %c0_i32_0 = arith.constant 0 : i32
    %c0_i32_1 = arith.constant 0 : i32
    return %c0_i32, %c0_i32_0 : i32, i32
  }
  func.func @transform_5(%arg0: i32) -> (i32, i32) {
    %c0_i32 = arith.constant 0 : i32
    %c0_i32_0 = arith.constant 0 : i32
    return %arg0, %c0_i32 : i32, i32
  }
}

</mosaic_0001>

<bundles_post_ra>
// kernel: tpu_custom_call.1
= control target key start
LH: loop header
LB: loop body
LE: loop exit
PB: predicated region body
PF: predicated region fallthrough
CT: control target
= control target key end

     0   :  { %11 = vsyncpa [#allocation6], 0  ;;  %s506_s0 = inlined_call_operand.vmem [shape: f32[2], index: 0, kind: input, shape index: {}]   ;;  %s507_s1 = inlined_call_operand.<no memory space> [shape: s32[1], index: 1, kind: input, shape index: {}]   ;;  %s508_s2 = inlined_call_operand.hbm [shape: f32[16,128], index: 2, kind: input, shape index: {}]   ;;  %s509_s3 = inlined_call_operand.hbm [shape: bf16[128,128], index: 3, kind: input, shape index: {}]   ;;  %s510_s4 = inlined_call_operand.vmem [shape: f32[1,128], index: 4, kind: input, shape index: {}]   ;;  %s511_s5 = inlined_call_operand.hbm [shape: f32[16,128], index: 5, kind: output, shape index: {}]  }
   0x1   :  { %12 = vsyncpa [#allocation4], 0 }
   0x2   :  { %13 = vsyncpa [#allocation9], 0 }
   0x3   :  { %14 = vsyncpa [#allocation5], 0  ;;  %s21_s1 = sshll.u32 %s506_s0, 4  ;;  %s22_s1 = int_to_ptr.vmem [resolvable:$true] %s21_s1 }
   0x4   :  { %s312_s20 = scalar_lea.vmem %s22_s1, 16  ;;  %p317_p1 = scmp.lt.s32.totalorder %s22_s1, %s22_s1 }
   0x5   :  { %p313_p0 = scmp.ne.s32.totalorder %s22_s1, %s312_s20  ;;  %p318_p2 = scmp.lt.s32.totalorder %s312_s20, %s312_s20 }
   0x7   :  { %p319_p3 = por %p318_p2, %p317_p1 }
   0x9   :  { %p320_p4 = pnand %p319_p3, %p313_p0 }
   0xb   :  { %323 = shalt.err (!%p320_p4)
}
   0xc   :  { %s398_s21 = smov [#allocation3]   ;;  %s399_s22 = smov [#allocation7]  }
   0xd   :  { %24 = dma.vmem_to_smem %s22_s1, 16, %s398_s21, [#allocation6]  }
   0xe   :  { %s32_s23 = sshll.u32 %s399_s22, 4  ;;  %s324_s26 = scalar_lea.hbm %s508_s2, 256  ;;  %s33_s23 = int_to_ptr.vmem [resolvable:$true] %s32_s23 }
   0xf   :  { %p325_p5 = scmp.ne.s32.totalorder %s508_s2, %s324_s26  ;;  %p328_p6 = scmp.lt.u32.totalorder %s324_s26, %s508_s2 }
  0x11   :  { %p330_p7 = pnand %p328_p6, %p325_p5 }
  0x13   :  { %333 = shalt.err (!%p330_p7)
}
  0x14   :  { %s334_s30 = scalar_lea.vmem %s33_s23, 256  ;;  %p339_p9 = scmp.lt.s32.totalorder %s33_s23, %s33_s23 }
  0x15   :  { %p335_p8 = scmp.ne.s32.totalorder %s33_s23, %s334_s30  ;;  %p340_p10 = scmp.lt.s32.totalorder %s334_s30, %s334_s30 }
  0x17   :  { %p341_p11 = por %p340_p10, %p339_p9 }
  0x19   :  { %p342_p12 = pnand %p341_p11, %p335_p8 }
  0x1b   :  { %345 = shalt.err (!%p342_p12)
}
  0x1c   :  { %s400_s6 = smov 128   ;;  %s401_s7 = smov 8  }
  0x1d   :  { %38 = dma.hbm_to_vmem [thread:$0]  %s508_s2, 256, %s33_s23, [#allocation4], %s400_s6, %s400_s6, %s401_s7  }
  0x1e   :  { %s402_s10 = smov [#allocation8]   ;;  %s346_s14 = scalar_lea.hbm %s509_s3, 1024 }
  0x1f   :  { %s44_s11 = sshll.u32 %s402_s10, 4  ;;  %p347_p13 = scmp.ne.s32.totalorder %s509_s3, %s346_s14  ;;  %s45_s11 = int_to_ptr.vmem [resolvable:$true] %s44_s11 }
  0x20   :  { %p350_p0 = scmp.lt.u32.totalorder %s346_s14, %s509_s3 }
  0x22   :  { %p352_p1 = pnand %p350_p0, %p347_p13 }
  0x24   :  { %355 = shalt.err (!%p352_p1)
}
  0x25   :  { %s356_s19 = scalar_lea.vmem %s45_s11, 1024  ;;  %p361_p3 = scmp.lt.s32.totalorder %s45_s11, %s45_s11 }
  0x26   :  { %p357_p2 = scmp.ne.s32.totalorder %s45_s11, %s356_s19  ;;  %p362_p4 = scmp.lt.s32.totalorder %s356_s19, %s356_s19 }
  0x28   :  { %p363_p5 = por %p362_p4, %p361_p3 }
  0x2a   :  { %p364_p6 = pnand %p363_p5, %p357_p2 }
  0x2c   :  { %367 = shalt.err (!%p364_p6)
}
  0x2d   :  { %s403_s2 = smov 64   ;;  %s404_s1 = smov 4  }
  0x2e   :  { %50 = dma.hbm_to_vmem [thread:$0]  %s509_s3, 1024, %s45_s11, [#allocation9], %s403_s2, %s403_s2, %s404_s1  }
  0x2f   :  { %390 = dma.done.wait [#allocation6], 16  }
  0x30   :  { %391 = vsyncadd [#allocation6], 4294967280 }
  0x31   :  { %392 = dma.done.wait [#allocation4], 256  }
  0x32   :  { %393 = vsyncadd [#allocation4], 4294967040 }
  0x33   :  { %394 = dma.done.wait [#allocation9], 1024  }
  0x34   :  { %395 = vsyncadd [#allocation9], 4294966272 }
  0x35   :  { %62 = sfence }
  0x36   :  { %v468_v0 = vld [vmem:[#allocation7] sm:$0xff]  ;;  %v470_v1 = vld [vmem:[#allocation7 + $0x8] sm:$0xff]  ;;  %v296_v10 = vld [vmem:[#allocation8] sm:$0xff]   ;;  %v405_v11 = vmov 0.0   ;;  %vm406_vm0 = vmmov 0   ;;  %s64_s3 = sld [smem:[#allocation3]] }
  0x37   :  { %68 = vadd.xlane.f32.xlu0 %v468_v0  ;;  %266 = vmatprep.subr.bf16.mxu0 %v405_v11  ;;  %v297_v12 = vld [vmem:[#allocation8 + $0x8] sm:$0xff]   ;;  %v298_v13 = vld [vmem:[#allocation8 + $0x10] sm:$0xff]   ;;  %v299_v14 = vld [vmem:[#allocation8 + $0x18] sm:$0xff]   ;;  %s247_s22 = sld [smem:[#allocation3 + $0x1]]  ;;  %s407_s25 = smov [#allocation10]  }
  0x38   :  { %267 = vmatpush3.bf16.msra.mxu0 %v296_v10  ;;  %v300_v15 = vld [vmem:[#allocation8 + $0x20] sm:$0xff]   ;;  %282 = vmatprep.mubr.msk.bf16.mxu0 %vm406_vm0, %v405_v11  ;;  %v301_v16 = vld [vmem:[#allocation8 + $0x28] sm:$0xff]   ;;  %v302_v17 = vld [vmem:[#allocation8 + $0x30] sm:$0xff]   ;;  %s233_s26 = sshll.u32 %s407_s25, 4  ;;  %s234_s26 = int_to_ptr.vmem [resolvable:$true] %s233_s26 }
  0x39   :  { %268 = vmatprep.subr.bf16.mxu0 %v405_v11  ;;  %v303_v18 = vld [vmem:[#allocation8 + $0x38] sm:$0xff]   ;;  %v248_v46 = vld [vmem:[%s510_s4] ss:$0 sm:$0xff]  ;;  %s368_s27 = scalar_lea.vmem %s234_s26, 256  ;;  %p373_p8 = scmp.lt.s32.totalorder %s234_s26, %s234_s26 }
  0x3a   :  { %p369_p7 = scmp.ne.s32.totalorder %s234_s26, %s368_s27  ;;  %p374_p9 = scmp.lt.s32.totalorder %s368_s27, %s368_s27 }
  0x3b   :  { %70 = vadd.xlane.f32.xlu0 %v470_v1 }
  0x3c   :  { %269 = vmatpush3.bf16.msra.mxu0 %v297_v12  ;;  %v103_v35 = vstv %s64_s3  ;;  %p375_p10 = por %p374_p9, %p373_p8 }
  0x3d   :  { %270 = vmatprep.subr.bf16.mxu0 %v405_v11  ;;  %v108_v41 = vstv %s247_s22 }
  0x3e   :  { %p376_p11 = pnand %p375_p10, %p369_p7 }
  0x40   :  { %271 = vmatpush3.bf16.msra.mxu0 %v298_v13 }
  0x41   :  { %272 = vmatprep.subr.bf16.mxu0 %v405_v11 }
  0x44   :  { %273 = vmatpush3.bf16.msra.mxu0 %v299_v14 }
  0x45   :  { %274 = vmatprep.subr.bf16.mxu0 %v405_v11 }
  0x48   :  { %275 = vmatpush3.bf16.msra.mxu0 %v300_v15 }
  0x49   :  { %276 = vmatprep.subr.bf16.mxu0 %v405_v11 }
  0x4c   :  { %277 = vmatpush3.bf16.msra.mxu0 %v301_v16 }
  0x4d   :  { %278 = vmatprep.subr.bf16.mxu0 %v405_v11 }
  0x50   :  { %279 = vmatpush3.bf16.msra.mxu0 %v302_v17 }
  0x51   :  { %280 = vmatprep.subr.bf16.mxu0 %v405_v11 }
  0x54   :  { %281 = vmatpush3.bf16.msra.mxu0 %v303_v18 }
  0xc4   :  { %v69_v2 = vpop.xlane.xlu0 %68 }
  0xc5   :  { %v73_v3 = vmul.f32 0.0078125, %v69_v2 }
  0xc7   :  { %v475_v4 = vsub.f32 %v468_v0, %v73_v3 }
  0xc8   :  { %v71_v5 = vpop.xlane.xlu0 %70 }
  0xc9   :  { %v74_v6 = vmul.f32 0.0078125, %v71_v5  ;;  %v77_v7 = vmul.f32 %v475_v4, %v475_v4 }
  0xcb   :  { %v480_v8 = vsub.f32 %v470_v1, %v74_v6  ;;  %79 = vadd.xlane.f32.xlu1 %v77_v7 }
  0xcd   :  { %v78_v9 = vmul.f32 %v480_v8, %v480_v8 }
  0xcf   :  { %81 = vadd.xlane.f32.xlu1 %v78_v9 }
 0x158   :  { %v80_v19 = vpop.xlane.xlu1 %79 }
 0x159   :  { %v83_v20 = vmul.f32 0.007874016, %v80_v19 }
 0x15b   :  { %304 = vrsqrt.f32 %v83_v20  ;;  %vm87_vm1 = vcmp.eq.f32.partialorder %v83_v20, inf  ;;  %v90_v25 = vand.u32 2147483648, %v83_v20  ;;  %vm89_vm2 = vcmp.eq.f32.partialorder %v83_v20, 0.0 }
 0x15c   :  { %v82_v21 = vpop.xlane.xlu1 %81 }
 0x15d   :  { %v84_v22 = vmul.f32 0.007874016, %v82_v21 }
 0x15f   :  { %306 = vrsqrt.f32 %v84_v22  ;;  %vm94_vm3 = vcmp.eq.f32.partialorder %v84_v22, inf  ;;  %v97_v31 = vand.u32 2147483648, %v84_v22  ;;  %vm96_vm4 = vcmp.eq.f32.partialorder %v84_v22, 0.0 }
 0x165   :  { %v305_v23 = vpop.eup %304 }
 0x166   :  { %v86_v24 = vmul.f32 %v305_v23, %v83_v20 }
 0x168   :  { %v88_v26 = vsel %vm87_vm1, %v83_v20, %v86_v24 }
 0x169   :  { %v307_v27 = vpop.eup %306  ;;  %v91_v28 = vsel %vm89_vm2, %v90_v25, %v88_v26 }
 0x16a   :  { %v99_v29 = vadd.f32 1e-06, %v91_v28  ;;  %v93_v30 = vmul.f32 %v307_v27, %v84_v22 }
 0x16c   :  { %v95_v32 = vsel %vm94_vm3, %v84_v22, %v93_v30  ;;  %308 = vrcp.f32 %v99_v29 }
 0x16d   :  { %v98_v33 = vsel %vm96_vm4, %v97_v31, %v95_v32 }
 0x16e   :  { %v100_v34 = vadd.f32 1e-06, %v98_v33 }
 0x170   :  { %310 = vrcp.f32 %v100_v34 }
 0x176   :  { %v309_v36 = vpop.eup %308 }
 0x177   :  { %v104_v37 = vmul.f32 %v309_v36, %v103_v35 }
 0x179   :  { %v106_v40 = vmul.f32 %v104_v37, %v475_v4 }
 0x17a   :  { %v311_v38 = vpop.eup %310 }
 0x17b   :  { %v105_v39 = vmul.f32 %v311_v38, %v103_v35  ;;  %v109_v43 = vadd.f32 %v108_v41, %v106_v40 }
 0x17d   :  { %v107_v42 = vmul.f32 %v105_v39, %v480_v8 }
 0x17f   :  { %v110_v44 = vadd.f32 %v108_v41, %v107_v42 }
 0x181   :  { %v111_v45 = vpack.c.bf16 %v110_v44, %v109_v43 }
 0x183   :  { %283 = vmatmul.mubr.bf16.vlgmr.msra.gmra.mrb[0].mxu0 %v111_v45 }
 0x256   :  { %v217_v47 = vpop.f32.mrb[0].mxu0 }
 0x257   :  { %v218_v48 = vadd.f32 %v248_v46, %v217_v47  ;;  %v284_v49 = vpop.f32.mrb[1].mxu0 }
 0x258   :  { %v220_v50 = vpop.f32.mrb[2].mxu0 }
 0x259   :  { %v221_v51 = vadd.f32 %v248_v46, %v220_v50  ;;  %v285_v52 = vpop.f32.mrb[3].mxu0  ;;  %v224_v53 = vadd.f32 %v218_v48, %v468_v0 }
 0x25b   :  { %v225_v54 = vadd.f32 %v221_v51, %v470_v1  ;;  %226 = vst [vmem:[#allocation10] sm:$0xff] %v224_v53 }
 0x25d   :  { %227 = vst [vmem:[#allocation10 + $0x8] sm:$0xff] %v225_v54 }
 0x25e   :  { %379 = shalt.err (!%p376_p11)
}
 0x25f   :  { %s380_s0 = scalar_lea.hbm %s511_s5, 256 }
 0x260   :  { %p381_p12 = scmp.ne.s32.totalorder %s511_s5, %s380_s0  ;;  %p384_p13 = scmp.lt.u32.totalorder %s380_s0, %s511_s5 }
 0x262   :  { %p386_p0 = pnand %p384_p13, %p381_p12 }
 0x264   :  { %389 = shalt.err (!%p386_p0)
}
 0x265   :  { %239 = dma.vmem_to_hbm [thread:$0]  %s234_s26, 256, %s511_s5, [#allocation5], %s400_s6, %s400_s6, %s401_s7  }
 0x266   :  { %396 = dma.done.wait [#allocation5], 256  }
 0x267   :  { %397 = vsyncadd [#allocation5], 4294967040 }
 0x268   :  { %243 = vsyncpa [#allocation4], 1 }
 0x269   :  { %244 = vsyncpa [#allocation9], 1 }
 0x26a   :  { %245 = vsyncpa [#allocation5], 1 }
 0x26b   :  { %246 = vsyncpa [#allocation6], 1 }

</bundles_post_ra>
